<compile_context>
chip_gen: v5e
topology: v5e:2x2
jax: 0.10.0
libtpu: 0.0.40
codegen_flags: <defaults>
</compile_context>

<pallas_src>
import jax
import jax.numpy as jnp
from jax.experimental import pallas as pl
from jax.experimental.pallas import tpu as pltpu

_LANE = 128
_SUBLANE = 8
_MAX_TB = 2048                      # rows per batch tile (multiple of 8)
_VMEM_BUDGET = 24 * 1024 * 1024     # headroom under the 32 MiB scoped default


def _round_up(x, m):
    return ((x + m - 1) // m) * m


def _pick_tb(B, F):
    """Pick the batch tile: as large as possible under the VMEM budget."""
    # VMEM footprint per row (double-buffered input + output tiles).
    # Input row (10 x f32) inflates to a full 128-lane sublane row = 512 B;
    # output row occupies round_up(F,128) lanes * 4 B in VMEM.
    f_vmem = _round_up(max(F, 1), _LANE)
    per_row = 2 * (512 + 4 * f_vmem)
    tb = _VMEM_BUDGET // per_row
    tb = max(_SUBLANE, min(tb, _MAX_TB))
    tb = (tb // _SUBLANE) * _SUBLANE
    if B <= tb:
        return B          # single block covering the whole batch (full-dim block)
    return tb             # multiple of 8; partial last block is clipped by Pallas


def _box_encoder_kernel(x_ref, w_ref, b_ref, o_ref):
    # x: (TB, K), w: (K, F), b: (1, F)  ->  o: (TB, F)
    y = jnp.dot(x_ref[...], w_ref[...], preferred_element_type=jnp.float32)
    y = y + b_ref[...]                      # broadcast bias over the tile rows
    o_ref[...] = jnp.maximum(y, 0.0).astype(o_ref.dtype)


def box_encoder(box_input, weight_t, bias):
    """relu(box_input @ weight_t + bias) via a batch-tiled Pallas kernel.

    box_input: (B, 10) float32
    weight_t : (10, F) float32   (transpose of PyTorch's (F, 10) weight)
    bias     : (F,)    float32
    returns  : (B, F)  float32
    """
    B, K = box_input.shape
    _, F = weight_t.shape
    dtype = box_input.dtype

    bias2d = bias.reshape(1, F)             # metadata-only reshape, no HBM copy

    TB = _pick_tb(B, F)
    grid = (pl.cdiv(B, TB),)

    cost = pl.CostEstimate(
        flops=2 * B * K * F,
        bytes_accessed=(B * K + K * F + F + B * F) * 4,
        transcendentals=0,
    )

    return pl.pallas_call(
        _box_encoder_kernel,
        out_shape=jax.ShapeDtypeStruct((B, F), dtype),
        grid=grid,
        in_specs=[
            pl.BlockSpec((TB, K), lambda i: (i, 0)),   # batch-tiled input
            pl.BlockSpec((K, F), lambda i: (0, 0)),    # weight stays resident
            pl.BlockSpec((1, F), lambda i: (0, 0)),    # bias stays resident
        ],
        out_specs=pl.BlockSpec((TB, F), lambda i: (i, 0)),
        compiler_params=pltpu.CompilerParams(
            dimension_semantics=("parallel",),         # both TCs on v7x
        ),
        cost_estimate=cost,
    )(box_input, weight_t, bias2d)


if __name__ == "__main__":
    feature_size = 32
    batch = 8
    in_features = 10

    key = jax.random.PRNGKey(0)
    k_x, k_w, k_b = jax.random.split(key, 3)

    # Deterministic PyTorch-style Linear init: U(-1/sqrt(in), 1/sqrt(in)).
    bound = 1.0 / (in_features ** 0.5)
    weight = jax.random.uniform(
        k_w, (feature_size, in_features), jnp.float32, -bound, bound
    )  # PyTorch stores (out, in); we pass the transpose to the kernel.
    bias = jax.random.uniform(
        k_b, (feature_size,), jnp.float32, -bound, bound
    )

    box_input = jax.random.normal(k_x, (batch, in_features), jnp.float32)

    out = box_encoder(box_input, weight.T, bias)
    out = jax.block_until_ready(out)

    # Reference check in plain JAX.
    ref = jnp.maximum(box_input @ weight.T + bias, 0.0)
    assert out.shape == (batch, feature_size)
    assert jnp.allclose(out, ref, atol=1e-5, rtol=1e-5)

    print("KERNEL_OK")
</pallas_src>

<mosaic_0001>
module attributes {stable_mosaic.version = 11 : i64} {
  func.func @_box_encoder_kernel(%arg0: i32, %arg1: memref<8x10xf32, #tpu.memory_space<vmem>>, %arg2: memref<10x32xf32, #tpu.memory_space<vmem>>, %arg3: memref<1x32xf32, #tpu.memory_space<vmem>>, %arg4: memref<8x32xf32, #tpu.memory_space<vmem>>) attributes {dimension_semantics = [#tpu.dimension_semantics<parallel>], iteration_bounds = array<i64: 1>, scalar_prefetch = 0 : i64, scratch_operands = 0 : i64, tpu.core_type = #tpu.core_type<tc>, window_params = [{transform_indices = @transform_0, window_bounds = array<i64: 8, 10>}, {pipeline_mode = #tpu.pipeline_mode<synchronous>, transform_indices = @transform_1, window_bounds = array<i64: 10, 32>}, {pipeline_mode = #tpu.pipeline_mode<synchronous>, transform_indices = @transform_2, window_bounds = array<i64: 1, 32>}, {transform_indices = @transform_3, window_bounds = array<i64: 8, 32>}]} {
    %c0 = arith.constant 0 : index
    %c0_0 = arith.constant 0 : index
    %0 = vector.load %arg1[%c0, %c0_0] : memref<8x10xf32, #tpu.memory_space<vmem>>, vector<8x10xf32>
    %c0_1 = arith.constant 0 : index
    %c0_2 = arith.constant 0 : index
    %1 = vector.load %arg2[%c0_1, %c0_2] : memref<10x32xf32, #tpu.memory_space<vmem>>, vector<10x32xf32>
    %cst = arith.constant dense<0.000000e+00> : vector<8x32xf32>
    %2 = tpu.matmul %0, %1, %cst {dimension_numbers = #tpu.dot_dimension_numbers<[1], [0], [0], [1], [0, 0, 1, 1], [], []>} : vector<8x10xf32>, vector<10x32xf32>, vector<8x32xf32> -> vector<8x32xf32>
    %c0_3 = arith.constant 0 : index
    %c0_4 = arith.constant 0 : index
    %3 = vector.load %arg3[%c0_3, %c0_4] : memref<1x32xf32, #tpu.memory_space<vmem>>, vector<1x32xf32>
    %4 = vector.broadcast %3 : vector<1x32xf32> to vector<8x32xf32>
    %5 = arith.addf %2, %4 : vector<8x32xf32>
    %cst_5 = arith.constant 0.000000e+00 : f32
    %6 = vector.broadcast %cst_5 : f32 to vector<8x32xf32>
    %7 = arith.maximumf %5, %6 : vector<8x32xf32>
    %c0_6 = arith.constant 0 : index
    %c0_7 = arith.constant 0 : index
    %8 = vector.load %arg4[%c0_6, %c0_7] : memref<8x32xf32, #tpu.memory_space<vmem>>, vector<8x32xf32>
    tpu.vector_store %arg4[%c0_6, %c0_7], %7 {strides = array<i32>} : memref<8x32xf32, #tpu.memory_space<vmem>>, vector<8x32xf32>,
    return
  }
  func.func @transform_0(%arg0: i32) -> (i32, i32) {
    %c0_i32 = arith.constant 0 : i32
    %c0_i32_0 = arith.constant 0 : i32
    return %arg0, %c0_i32 : i32, i32
  }
  func.func @transform_1(%arg0: i32) -> (i32, i32) {
    %c0_i32 = arith.constant 0 : i32
    %c0_i32_0 = arith.constant 0 : i32
    %c0_i32_1 = arith.constant 0 : i32
    return %c0_i32, %c0_i32_0 : i32, i32
  }
  func.func @transform_2(%arg0: i32) -> (i32, i32) {
    %c0_i32 = arith.constant 0 : i32
    %c0_i32_0 = arith.constant 0 : i32
    %c0_i32_1 = arith.constant 0 : i32
    return %c0_i32, %c0_i32_0 : i32, i32
  }
  func.func @transform_3(%arg0: i32) -> (i32, i32) {
    %c0_i32 = arith.constant 0 : i32
    %c0_i32_0 = arith.constant 0 : i32
    return %arg0, %c0_i32 : i32, i32
  }
}

</mosaic_0001>

<bundles_post_ra>
// kernel: tpu_custom_call.1
= control target key start
LH: loop header
LB: loop body
LE: loop exit
PB: predicated region body
PF: predicated region fallthrough
CT: control target
= control target key end

     0   :  { %8 = vsyncpa [#allocation3], 0  ;;  %s224_s0 = inlined_call_operand.hbm [shape: f32[8,10], index: 0, kind: input, shape index: {}]   ;;  %s225_s1 = inlined_call_operand.hbm [shape: f32[10,32], index: 1, kind: input, shape index: {}]   ;;  %s226_s2 = inlined_call_operand.vmem [shape: f32[1,32], index: 2, kind: input, shape index: {}]   ;;  %s227_s3 = inlined_call_operand.hbm [shape: f32[8,32], index: 3, kind: output, shape index: {}]  }
   0x1   :  { %9 = vsyncpa [#allocation6], 0 }
   0x2   :  { %10 = vsyncpa [#allocation4], 0  ;;  %s16_s14 = sshll.u32 %s224_s0, 4  ;;  %s187_s15 = smov [#allocation2]   ;;  %s17_s14 = int_to_ptr.hbm [resolvable:$true] %s16_s14 }
   0x3   :  { %s18_s16 = sshll.u32 %s187_s15, 4  ;;  %s26_s19 = sshll.u32 %s225_s1, 4  ;;  %s19_s16 = int_to_ptr.vmem [resolvable:$true] %s18_s16  ;;  %s27_s19 = int_to_ptr.hbm [resolvable:$true] %s26_s19 }
   0x4   :  { %21 = dma.hbm_to_vmem [thread:$0]  %s17_s14, 128, %s19_s16, [#allocation3]  }
   0x5   :  { %s188_s20 = smov [#allocation5]   ;;  %s189_s22 = smov 128  }
   0x6   :  { %s28_s21 = sshll.u32 %s188_s20, 4  ;;  %s190_s23 = smov 8   ;;  %s29_s21 = int_to_ptr.vmem [resolvable:$true] %s28_s21 }
   0x7   :  { %34 = dma.hbm_to_vmem [thread:$0]  %s27_s19, 256, %s29_s21, [#allocation6], %s189_s22, %s189_s22, %s190_s23  }
   0x8   :  { %181 = dma.done.wait [#allocation3], 128  }
   0x9   :  { %182 = vsyncadd [#allocation3], 4294967168 }
   0xa   :  { %183 = dma.done.wait [#allocation6], 256  }
   0xb   :  { %184 = vsyncadd [#allocation6], 4294967040  ;;  %vm56_vm0 = vcmask 1041408   ;;  %v47_v0 = vld [vmem:[#allocation5 + $0x8] sm:$0x3]  ;;  %v46_v1 = vld [vmem:[#allocation5] sm:$0xff] }
   0xc   :  { %101 = vmatpush.msk.msra.mxu0 %vm56_vm0, %v47_v0  ;;  %v45_v2 = vld [vmem:[#allocation2] sm:$0xff]  ;;  %vm52_vm1 = vcmask 80896   ;;  %s191_s24 = smov [#allocation7]   ;;  %s90_s28 = sshll.u32 %s227_s3, 4  ;;  %vm81_vm2 = vcmask 261120   ;;  %s91_s28 = int_to_ptr.hbm [resolvable:$true] %s90_s28 }
   0xd   :  { %v108_v3 = vld [vmem:[%s226_s2] ss:$0 sm:$0xff]  ;;  %s88_s25 = sshll.u32 %s191_s24, 4  ;;  %s89_s25 = int_to_ptr.vmem [resolvable:$true] %s88_s25 }
   0xe   :  { %75 = vmatpush.msra.mxu0 %v46_v1 }
   0xf   :  { %102 = vmatmul.msk.f32.vlgmr.msra.gmra.mxu0 %vm52_vm1, %v45_v2 }
  0x8c   :  { %v77_v4 = vpop.f32.mrf.mxu0 }
  0x8d   :  { %v78_v5 = vadd.f32 %v108_v3, %v77_v4 }
  0x8f   :  { %v80_v6 = vmax.f32 %v78_v5, 0.0 }
  0x91   :  { %82 = vst.msk [vmem:[#allocation7] sm:$0xff] %vm81_vm2, %v80_v6 }
  0x92   :  { %93 = dma.vmem_to_hbm [thread:$0]  %s89_s25, 128, %s91_s28, [#allocation4]  }
  0x93   :  { %185 = dma.done.wait [#allocation4], 128  }
  0x94   :  { %186 = vsyncadd [#allocation4], 4294967168 }
  0x95   :  { %98 = vsyncpa [#allocation3], 1 }
  0x96   :  { %99 = vsyncpa [#allocation6], 1 }
  0x97   :  { %100 = vsyncpa [#allocation4], 1 }

</bundles_post_ra>
